<compile_context>
chip_gen: v6e
topology: v6e:2x2x1
jax: 0.10.0
libtpu: 0.0.40
codegen_flags: <defaults>
</compile_context>

<pallas_src>
import functools

import jax
import jax.numpy as jnp
from jax.experimental import pallas as pl
from jax.experimental.pallas import tpu as pltpu


def _encoder_image_aggr_kernel(
    img_ref,             # (Bblk, N, Din) f32
    w_in_ref, b_in_ref,  # (Din, E+H) = [wfc | w1*bn_scale],  (1, E+H) f32
    w2_ref, b2_ref,      # (H, E), (1, E)
    wl1_ref, bl1_ref,    # (E, E), (1, E)
    feat_img_ref,        # (1, Bblk, E) f32
    feat_in_ref,         # (Bblk, N, E) f32
):
    Bblk, N, Din = img_ref.shape
    H, E = w2_ref.shape
    dot_dtype = w_in_ref.dtype          # f32, or bf16 (weights pre-cast on host)

    # Flatten (batch block, regions) into one MXU-friendly M dimension.
    x = img_ref[...].reshape(Bblk * N, Din).astype(dot_dtype)

    # Fused matmul: fc branch + (BN-folded) mlp layer-0 share the same LHS.
    z = jnp.dot(x, w_in_ref[...], preferred_element_type=jnp.float32) + b_in_ref[...]
    fc_out = z[:, :E]                                       # (M, E)
    h = jnp.maximum(z[:, E:], 0.0)                          # (M, H)  ReLU in f32

    mlp_out = jnp.dot(h.astype(dot_dtype), w2_ref[...],
                      preferred_element_type=jnp.float32) + b2_ref[...]
    features = mlp_out + fc_out                             # (M, E) == img_emb

    feat_in = jnp.dot(features.astype(dot_dtype), wl1_ref[...],
                      preferred_element_type=jnp.float32) + bl1_ref[...]

    # Per-image softmax over the region axis (axis=1 of (Bblk, N, E)).
    feat_in_b = feat_in.reshape(Bblk, N, E)
    features_b = features.reshape(Bblk, N, E)
    m = jnp.max(feat_in_b, axis=1, keepdims=True)
    e = jnp.exp(feat_in_b - m)
    denom = jnp.sum(e, axis=1, keepdims=True)
    attn = e * pl.reciprocal(denom, approx=True)            # EUP, frees VALU
    pooled = jnp.sum(attn * features_b, axis=1)             # (Bblk, E)

    # l2norm over the feature axis (matches torch: sqrt(sum(x^2)) + eps, then div).
    norm = jnp.sqrt(jnp.sum(pooled * pooled, axis=-1, keepdims=True)) + 1e-8
    feat_img_ref[0] = pooled * pl.reciprocal(norm, approx=True)
    feat_in_ref[...] = feat_in_b


def encoder_image_aggr(images, params, image_lengths=None, *,
                       block_b=None, weight_dtype=jnp.float32):
    """images: (B, N, Din) f32.  image_lengths is accepted (like the PyTorch
    forward) but unused in the eval path.  Returns (feature_img, features_in)."""
    del image_lengths  # unused by the reference forward pass
    B, N, Din = images.shape
    E = params["wfc"].shape[1]
    H = params["w1"].shape[1]

    # ---- host-side weight prep: exact eval-mode BN fold + fc/mlp0 concat ----
    w1f = params["w1"] * params["bn_scale"]
    b1f = params["b1"] * params["bn_scale"] + params["bn_shift"]
    w_in = jnp.concatenate([params["wfc"], w1f], axis=1).astype(weight_dtype)
    b_in = jnp.concatenate([params["bfc"], b1f], axis=1).astype(jnp.float32)
    w2 = params["w2"].astype(weight_dtype)
    wl1 = params["wl1"].astype(weight_dtype)
    b2 = params["b2"].astype(jnp.float32)
    bl1 = params["bl1"].astype(jnp.float32)

    # ---- pick a batch block: fill the MXU M dim (~256 rows) but keep >=2 grid
    #      steps so both v7x TensorCores get work via "parallel" semantics. ----
    if block_b is None:
        block_b = max(1, 256 // max(N, 1))
        if B >= 2:
            block_b = min(block_b, max(1, B // 2))
    block_b = max(1, min(block_b, B))
    Bp = pl.cdiv(B, block_b) * block_b
    if Bp != B:
        images = jnp.pad(images, ((0, Bp - B), (0, 0), (0, 0)))
    num_blocks = Bp // block_b
    grid = (num_blocks,)

    const2 = lambda b: (0, 0)
    in_specs = [
        pl.BlockSpec((block_b, N, Din), lambda b: (b, 0, 0)),
        # Weights / biases are grid-invariant (constant index maps).
        pl.BlockSpec((Din, E + H), const2), pl.BlockSpec((1, E + H), const2),
        pl.BlockSpec((H, E), const2), pl.BlockSpec((1, E), const2),
        pl.BlockSpec((E, E), const2), pl.BlockSpec((1, E), const2),
    ]
    out_specs = [
        # Lane-dense pooled slab: block_b rows of E lanes per step.
        pl.BlockSpec((1, block_b, E), lambda b: (b, 0, 0)),
        pl.BlockSpec((block_b, N, E), lambda b: (b, 0, 0)),
    ]
    out_shape = [
        jax.ShapeDtypeStruct((num_blocks, block_b, E), jnp.float32),
        jax.ShapeDtypeStruct((Bp, N, E), jnp.float32),
    ]

    feat_img, feat_in = pl.pallas_call(
        _encoder_image_aggr_kernel,
        grid=grid,
        in_specs=in_specs,
        out_specs=out_specs,
        out_shape=out_shape,
        compiler_params=pltpu.CompilerParams(
            dimension_semantics=("parallel",),
            vmem_limit_bytes=64 * 1024 * 1024,
        ),
    )(images, w_in, b_in, w2, b2, wl1, bl1)

    feat_img = feat_img.reshape(Bp, E)[:B]
    feat_in = feat_in[:B]
    return feat_img, feat_in


def make_params(key, img_dim, embed_size):
    """Deterministic synthetic parameters, mirroring the module's __init__."""
    H = embed_size // 2
    keys = jax.random.split(key, 4)

    # fc: Xavier-uniform weight as in init_weights(), bias = 0
    r = jnp.sqrt(6.0) / jnp.sqrt(img_dim + embed_size)
    wfc = jax.random.uniform(keys[0], (img_dim, embed_size), jnp.float32, -r, r)
    bfc = jnp.zeros((1, embed_size), jnp.float32)

    def linear(k, fan_in, fan_out):
        bound = 1.0 / jnp.sqrt(fan_in)
        kw, kb = jax.random.split(k)
        w = jax.random.uniform(kw, (fan_in, fan_out), jnp.float32, -bound, bound)
        b = jax.random.uniform(kb, (1, fan_out), jnp.float32, -bound, bound)
        return w, b

    w1, b1 = linear(keys[1], img_dim, H)               # mlp layer 0
    w2, b2 = linear(keys[2], H, embed_size)            # mlp layer 1
    wl1, bl1 = linear(keys[3], embed_size, embed_size)  # linear1

    # eval-mode BatchNorm1d(H): mean=0, var=1, gamma=1, beta=0, eps=1e-5
    bn_scale = jnp.full((1, H), 1.0 / jnp.sqrt(1.0 + 1e-5), jnp.float32)
    bn_shift = jnp.zeros((1, H), jnp.float32)

    return {
        "wfc": wfc, "bfc": bfc,
        "w1": w1, "b1": b1, "bn_scale": bn_scale, "bn_shift": bn_shift,
        "w2": w2, "b2": b2,
        "wl1": wl1, "bl1": bl1,
    }


def reference_forward(images, p, weight_dtype=jnp.float32):
    """Pure-JAX reference (optionally with bf16 dot inputs, f32 accumulate)."""
    c = lambda a: a.astype(weight_dtype)
    dot = functools.partial(jnp.dot, preferred_element_type=jnp.float32)
    fc_out = dot(c(images), c(p["wfc"])) + p["bfc"]
    h = dot(c(images), c(p["w1"])) + p["b1"]
    h = jnp.maximum(h * p["bn_scale"] + p["bn_shift"], 0.0)
    features = dot(c(h), c(p["w2"])) + p["b2"] + fc_out
    feat_in = dot(c(features), c(p["wl1"])) + p["bl1"]
    attn = jax.nn.softmax(feat_in, axis=1)
    pooled = jnp.sum(attn * features, axis=1)
    norm = jnp.sqrt(jnp.sum(pooled ** 2, axis=-1, keepdims=True)) + 1e-8
    return pooled / norm, feat_in


if __name__ == "__main__":
    B, N, IMG_DIM, EMBED = 4, 8, 64, 128

    key = jax.random.PRNGKey(0)
    k_img, k_par = jax.random.split(key)
    images = jax.random.normal(k_img, (B, N, IMG_DIM), jnp.float32)
    image_lengths = jnp.full((B,), N, jnp.float32)  # unused by the eval forward
    params = make_params(k_par, IMG_DIM, EMBED)

    # f32 run (exact module semantics; grid of 2 parallel batch blocks).
    feat_img, feat_in = encoder_image_aggr(images, params, image_lengths,
                                           weight_dtype=jnp.float32)
    jax.block_until_ready((feat_img, feat_in))

    ref_img, ref_in = reference_forward(images, params)
    assert feat_img.shape == (B, EMBED) and feat_in.shape == (B, N, EMBED)
    assert jnp.allclose(feat_in, ref_in, atol=1e-5, rtol=1e-5)
    # feature_img passes through EUP approx reciprocals -> slightly looser check.
    assert jnp.allclose(feat_img, ref_img, atol=2e-3, rtol=2e-3)

    # bf16-weight fast path (v6e/v7x): f32 accumulation, looser tolerance.
    feat_img_bf, feat_in_bf = encoder_image_aggr(images, params, image_lengths,
                                                 weight_dtype=jnp.bfloat16)
    jax.block_until_ready((feat_img_bf, feat_in_bf))
    ref_img_bf, ref_in_bf = reference_forward(images, params,
                                              weight_dtype=jnp.bfloat16)
    assert jnp.allclose(feat_in_bf, ref_in_bf, atol=5e-2, rtol=5e-2)
    assert jnp.allclose(feat_img_bf, ref_img_bf, atol=5e-2, rtol=5e-2)

    print("KERNEL_OK")
</pallas_src>

<mosaic_0001>
module attributes {stable_mosaic.version = 11 : i64} {
  func.func @_encoder_image_aggr_kernel(%arg0: i32, %arg1: memref<2x8x64xf32, #tpu.memory_space<vmem>>, %arg2: memref<64x192xf32, #tpu.memory_space<vmem>>, %arg3: memref<1x192xf32, #tpu.memory_space<vmem>>, %arg4: memref<64x128xf32, #tpu.memory_space<vmem>>, %arg5: memref<1x128xf32, #tpu.memory_space<vmem>>, %arg6: memref<128x128xf32, #tpu.memory_space<vmem>>, %arg7: memref<1x128xf32, #tpu.memory_space<vmem>>, %arg8: memref<1x2x128xf32, #tpu.memory_space<vmem>>, %arg9: memref<2x8x128xf32, #tpu.memory_space<vmem>>) attributes {dimension_semantics = [#tpu.dimension_semantics<parallel>], iteration_bounds = array<i64: 2>, scalar_prefetch = 0 : i64, scratch_operands = 0 : i64, tpu.core_type = #tpu.core_type<tc>, window_params = [{transform_indices = @transform_0, window_bounds = array<i64: 2, 8, 64>}, {pipeline_mode = #tpu.pipeline_mode<synchronous>, transform_indices = @transform_1, window_bounds = array<i64: 64, 192>}, {pipeline_mode = #tpu.pipeline_mode<synchronous>, transform_indices = @transform_2, window_bounds = array<i64: 1, 192>}, {pipeline_mode = #tpu.pipeline_mode<synchronous>, transform_indices = @transform_3, window_bounds = array<i64: 64, 128>}, {pipeline_mode = #tpu.pipeline_mode<synchronous>, transform_indices = @transform_4, window_bounds = array<i64: 1, 128>}, {pipeline_mode = #tpu.pipeline_mode<synchronous>, transform_indices = @transform_5, window_bounds = array<i64: 128, 128>}, {pipeline_mode = #tpu.pipeline_mode<synchronous>, transform_indices = @transform_6, window_bounds = array<i64: 1, 128>}, {transform_indices = @transform_7, window_bounds = array<i64: 1, 2, 128>}, {transform_indices = @transform_8, window_bounds = array<i64: 2, 8, 128>}]} {
    %c0 = arith.constant 0 : index
    %c0_0 = arith.constant 0 : index
    %c0_1 = arith.constant 0 : index
    %0 = vector.load %arg1[%c0, %c0_0, %c0_1] : memref<2x8x64xf32, #tpu.memory_space<vmem>>, vector<2x8x64xf32>
    %1 = vector.shape_cast %0 : vector<2x8x64xf32> to vector<16x64xf32>
    %c0_2 = arith.constant 0 : index
    %c0_3 = arith.constant 0 : index
    %2 = vector.load %arg2[%c0_2, %c0_3] : memref<64x192xf32, #tpu.memory_space<vmem>>, vector<64x192xf32>
    %cst = arith.constant dense<0.000000e+00> : vector<16x192xf32>
    %3 = tpu.matmul %1, %2, %cst {dimension_numbers = #tpu.dot_dimension_numbers<[1], [0], [0], [1], [0, 0, 1, 1], [], []>} : vector<16x64xf32>, vector<64x192xf32>, vector<16x192xf32> -> vector<16x192xf32>
    %c0_4 = arith.constant 0 : index
    %c0_5 = arith.constant 0 : index
    %4 = vector.load %arg3[%c0_4, %c0_5] : memref<1x192xf32, #tpu.memory_space<vmem>>, vector<1x192xf32>
    %5 = vector.broadcast %4 : vector<1x192xf32> to vector<16x192xf32>
    %6 = arith.addf %3, %5 : vector<16x192xf32>
    %7 = vector.extract_strided_slice %6 {offsets = [0, 0], sizes = [16, 128], strides = [1, 1]} : vector<16x192xf32> to vector<16x128xf32>
    %8 = vector.extract_strided_slice %6 {offsets = [0, 128], sizes = [16, 64], strides = [1, 1]} : vector<16x192xf32> to vector<16x64xf32>
    %cst_6 = arith.constant 0.000000e+00 : f32
    %9 = vector.broadcast %cst_6 : f32 to vector<16x64xf32>
    %10 = arith.maximumf %8, %9 : vector<16x64xf32>
    %c0_7 = arith.constant 0 : index
    %c0_8 = arith.constant 0 : index
    %11 = vector.load %arg4[%c0_7, %c0_8] : memref<64x128xf32, #tpu.memory_space<vmem>>, vector<64x128xf32>
    %cst_9 = arith.constant dense<0.000000e+00> : vector<16x128xf32>
    %12 = tpu.matmul %10, %11, %cst_9 {dimension_numbers = #tpu.dot_dimension_numbers<[1], [0], [0], [1], [0, 0, 1, 1], [], []>} : vector<16x64xf32>, vector<64x128xf32>, vector<16x128xf32> -> vector<16x128xf32>
    %c0_10 = arith.constant 0 : index
    %c0_11 = arith.constant 0 : index
    %13 = vector.load %arg5[%c0_10, %c0_11] : memref<1x128xf32, #tpu.memory_space<vmem>>, vector<1x128xf32>
    %14 = vector.broadcast %13 : vector<1x128xf32> to vector<16x128xf32>
    %15 = arith.addf %12, %14 : vector<16x128xf32>
    %16 = arith.addf %15, %7 : vector<16x128xf32>
    %c0_12 = arith.constant 0 : index
    %c0_13 = arith.constant 0 : index
    %17 = vector.load %arg6[%c0_12, %c0_13] : memref<128x128xf32, #tpu.memory_space<vmem>>, vector<128x128xf32>
    %cst_14 = arith.constant dense<0.000000e+00> : vector<16x128xf32>
    %18 = tpu.matmul %16, %17, %cst_14 {dimension_numbers = #tpu.dot_dimension_numbers<[1], [0], [0], [1], [0, 0, 1, 1], [], []>} : vector<16x128xf32>, vector<128x128xf32>, vector<16x128xf32> -> vector<16x128xf32>
    %c0_15 = arith.constant 0 : index
    %c0_16 = arith.constant 0 : index
    %19 = vector.load %arg7[%c0_15, %c0_16] : memref<1x128xf32, #tpu.memory_space<vmem>>, vector<1x128xf32>
    %20 = vector.broadcast %19 : vector<1x128xf32> to vector<16x128xf32>
    %21 = arith.addf %18, %20 : vector<16x128xf32>
    %22 = vector.shape_cast %21 : vector<16x128xf32> to vector<2x8x128xf32>
    %23 = vector.shape_cast %16 : vector<16x128xf32> to vector<2x8x128xf32>
    %cst_17 = arith.constant dense<0xFF800000> : vector<2x128xf32>
    %24 = vector.multi_reduction <maximumf>, %22, %cst_17 [1] : vector<2x8x128xf32> to vector<2x128xf32>
    %25 = vector.shape_cast %24 : vector<2x128xf32> to vector<2x1x128xf32>
    %26 = vector.broadcast %25 : vector<2x1x128xf32> to vector<2x8x128xf32>
    %27 = arith.subf %22, %26 : vector<2x8x128xf32>
    %28 = math.exp %27 : vector<2x8x128xf32>
    %cst_18 = arith.constant dense<0.000000e+00> : vector<2x128xf32>
    %29 = vector.multi_reduction <add>, %28, %cst_18 [1] : vector<2x8x128xf32> to vector<2x128xf32>
    %30 = vector.shape_cast %29 : vector<2x128xf32> to vector<2x1x128xf32>
    %31 = tpu.reciprocal %30 {approx = true} : vector<2x1x128xf32> -> vector<2x1x128xf32>
    %32 = vector.broadcast %31 : vector<2x1x128xf32> to vector<2x8x128xf32>
    %33 = arith.mulf %28, %32 : vector<2x8x128xf32>
    %34 = arith.mulf %33, %23 : vector<2x8x128xf32>
    %cst_19 = arith.constant dense<0.000000e+00> : vector<2x128xf32>
    %35 = vector.multi_reduction <add>, %34, %cst_19 [1] : vector<2x8x128xf32> to vector<2x128xf32>
    %36 = arith.mulf %35, %35 : vector<2x128xf32>
    %cst_20 = arith.constant dense<0.000000e+00> : vector<2xf32>
    %37 = vector.multi_reduction <add>, %36, %cst_20 [1] : vector<2x128xf32> to vector<2xf32>
    %38 = vector.shape_cast %37 : vector<2xf32> to vector<2x1xf32>
    %39 = math.sqrt %38 : vector<2x1xf32>
    %cst_21 = arith.constant 9.99999993E-9 : f32
    %40 = vector.broadcast %cst_21 : f32 to vector<2x1xf32>
    %41 = arith.addf %39, %40 : vector<2x1xf32>
    %42 = tpu.reciprocal %41 {approx = true} : vector<2x1xf32> -> vector<2x1xf32>
    %43 = vector.broadcast %42 : vector<2x1xf32> to vector<2x128xf32>
    %44 = arith.mulf %35, %43 : vector<2x128xf32>
    %c0_22 = arith.constant 0 : index
    %c0_23 = arith.constant 0 : index
    %c0_24 = arith.constant 0 : index
    %45 = vector.load %arg8[%c0_22, %c0_23, %c0_24] : memref<1x2x128xf32, #tpu.memory_space<vmem>>, vector<1x2x128xf32>
    %46 = vector.shape_cast %45 : vector<1x2x128xf32> to vector<2x128xf32>
    %47 = vector.shape_cast %44 : vector<2x128xf32> to vector<1x2x128xf32>
    tpu.vector_store %arg8[%c0_22, %c0_23, %c0_24], %47 {strides = array<i32>} : memref<1x2x128xf32, #tpu.memory_space<vmem>>, vector<1x2x128xf32>,
    %c0_25 = arith.constant 0 : index
    %c0_26 = arith.constant 0 : index
    %c0_27 = arith.constant 0 : index
    %48 = vector.load %arg9[%c0_25, %c0_26, %c0_27] : memref<2x8x128xf32, #tpu.memory_space<vmem>>, vector<2x8x128xf32>
    tpu.vector_store %arg9[%c0_25, %c0_26, %c0_27], %22 {strides = array<i32>} : memref<2x8x128xf32, #tpu.memory_space<vmem>>, vector<2x8x128xf32>,
    return
  }
  func.func @transform_0(%arg0: i32) -> (i32, i32, i32) {
    %c0_i32 = arith.constant 0 : i32
    %c0_i32_0 = arith.constant 0 : i32
    %c0_i32_1 = arith.constant 0 : i32
    return %arg0, %c0_i32, %c0_i32_0 : i32, i32, i32
  }
  func.func @transform_1(%arg0: i32) -> (i32, i32) {
    %c0_i32 = arith.constant 0 : i32
    %c0_i32_0 = arith.constant 0 : i32
    %c0_i32_1 = arith.constant 0 : i32
    return %c0_i32, %c0_i32_0 : i32, i32
  }
  func.func @transform_2(%arg0: i32) -> (i32, i32) {
    %c0_i32 = arith.constant 0 : i32
    %c0_i32_0 = arith.constant 0 : i32
    %c0_i32_1 = arith.constant 0 : i32
    return %c0_i32, %c0_i32_0 : i32, i32
  }
  func.func @transform_3(%arg0: i32) -> (i32, i32) {
    %c0_i32 = arith.constant 0 : i32
    %c0_i32_0 = arith.constant 0 : i32
    %c0_i32_1 = arith.constant 0 : i32
    return %c0_i32, %c0_i32_0 : i32, i32
  }
  func.func @transform_4(%arg0: i32) -> (i32, i32) {
    %c0_i32 = arith.constant 0 : i32
    %c0_i32_0 = arith.constant 0 : i32
    %c0_i32_1 = arith.constant 0 : i32
    return %c0_i32, %c0_i32_0 : i32, i32
  }
  func.func @transform_5(%arg0: i32) -> (i32, i32) {
    %c0_i32 = arith.constant 0 : i32
    %c0_i32_0 = arith.constant 0 : i32
    %c0_i32_1 = arith.constant 0 : i32
    return %c0_i32, %c0_i32_0 : i32, i32
  }
  func.func @transform_6(%arg0: i32) -> (i32, i32) {
    %c0_i32 = arith.constant 0 : i32
    %c0_i32_0 = arith.constant 0 : i32
    %c0_i32_1 = arith.constant 0 : i32
    return %c0_i32, %c0_i32_0 : i32, i32
  }
  func.func @transform_7(%arg0: i32) -> (i32, i32, i32) {
    %c0_i32 = arith.constant 0 : i32
    %c0_i32_0 = arith.constant 0 : i32
    %c0_i32_1 = arith.constant 0 : i32
    return %arg0, %c0_i32, %c0_i32_0 : i32, i32, i32
  }
  func.func @transform_8(%arg0: i32) -> (i32, i32, i32) {
    %c0_i32 = arith.constant 0 : i32
    %c0_i32_0 = arith.constant 0 : i32
    %c0_i32_1 = arith.constant 0 : i32
    return %arg0, %c0_i32, %c0_i32_0 : i32, i32, i32
  }
}

</mosaic_0001>

<bundles_post_ra>
// kernel: tpu_custom_call.1
= control target key start
LH: loop header
LB: loop body
LE: loop exit
PB: predicated region body
PF: predicated region fallthrough
CT: control target
= control target key end

     0   :  { %s1684_s0 = inlined_call_operand.hbm [shape: f32[4,8,64], index: 0, kind: input, shape index: {}]   ;;  %s1685_s1 = inlined_call_operand.hbm [shape: f32[64,192], index: 1, kind: input, shape index: {}]   ;;  %s1686_s2 = inlined_call_operand.vmem [shape: f32[1,192], index: 2, kind: input, shape index: {}]   ;;  %s1687_s3 = inlined_call_operand.hbm [shape: f32[64,128], index: 3, kind: input, shape index: {}]   ;;  %s1688_s4 = inlined_call_operand.vmem [shape: f32[1,128], index: 4, kind: input, shape index: {}]   ;;  %s1689_s5 = inlined_call_operand.hbm [shape: f32[128,128], index: 5, kind: input, shape index: {}]   ;;  %s1690_s6 = inlined_call_operand.vmem [shape: f32[1,128], index: 6, kind: input, shape index: {}]   ;;  %s1691_s7 = inlined_call_operand.hbm [shape: f32[2,2,128], index: 7, kind: output, shape index: {0}]   ;;  %s1692_s8 = inlined_call_operand.hbm [shape: f32[4,8,128], index: 8, kind: output, shape index: {1}]  }
   0x1   :  { %1699 = sst [smem:[#allocation18_spill]] %s1685_s1 }
   0x2   :  { %1700 = sst [smem:[#allocation19_spill]] %s1687_s3 }
   0x3   :  { %14 = vsyncpa [#allocation3], 0 }
   0x4   :  { %16 = vsyncpa [#allocation3 + $0x1], 0 }
   0x5   :  { %17 = vsyncpa [#allocation6], 0 }
   0x6   :  { %18 = vsyncpa [#allocation9], 0 }
   0x7   :  { %19 = vsyncpa [#allocation4], 0 }
   0x8   :  { %21 = vsyncpa [#allocation4 + $0x1], 0 }
   0x9   :  { %22 = vsyncpa [#allocation12], 0 }
   0xa   :  { %24 = vsyncpa [#allocation12 + $0x1], 0  ;;  %s1423_s27 = smov 0   ;;  %s1425_s28 = smov 0  }
   0xb   :  { %s1427_s29 = smov 0   ;;  %s1429_s30 = smov 0  }
   0xc LB: > { %s1444_s9 = sadd.s32 4294967295, %s1363_s30   ;;  %s941_s10 = sadd.s32 4294967294, %s1363_s30   ;;  %s1363_s30 = sphi %s1429_s30, %s1724_s30   ;;  %s1359_s29 = sphi %s1427_s29, %s1723_s29   ;;  %s1355_s28 = sphi %s1425_s28, %s1722_s28   ;;  %s1351_s27 = sphi %s1423_s27, %s1721_s27  }
   0xd   : > { %p50_p0 = scmp.ne.s32.totalorder %s1355_s28, %s1351_s27  ;;  %p1693_p1 = scmp.eq.s32.totalorder %s1444_s9, 0 }
   0xe   : > { %p206_p3 = scmp.eq.s32.totalorder %s941_s10, 1  ;;  %p942_p5 = scmp.ge.s32.totalorder %s1363_s30, 1 }
   0xf   : > { %p1453_p4 = por %p1693_p1, %p50_p0  ;;  %p239_p7 = scmp.lt.s32.totalorder %s1363_s30, 3 }
  0x10   : > { %p1458_p6 = por %p206_p3, %p50_p0  ;;  %s1365_s14 = smov [#allocation5]  }
  0x11   : > { %s1701_s11 = scalar_select %p1453_p4, 1, 0 }
  0x12   : > { %s1702_s12 = scalar_select %p1458_p6, 1, 0 }
  0x13   : > { %p1463_p8 = pnand %p942_p5, %p239_p7  ;;  %s251_s15 = sshll.u32 %s1365_s14, 4  ;;  %s252_s15 = int_to_ptr.vmem [resolvable:$true] %s251_s15 }
  0x14   : > { %s1366_s17 = smov [#allocation7]   ;;  %s1166_s19 = scalar_lea.vmem %s252_s15, 2048 }
  0x15   : > { %s1703_s13 = scalar_select %p1463_p8, 1, 0 }
  0x16   : > { %p1072_p9 = pneg %p1463_p8  ;;  %s267_s18 = sshll.u32 %s1366_s17, 4  ;;  %s268_s18 = int_to_ptr.vmem [resolvable:$true] %s267_s18 }
  0x17   : > { %p1167_p13 = scmp.ne.s32.totalorder %s252_s15, %s1166_s19  ;;  %p1174_p5 = scmp.lt.s32.totalorder %s252_s15, %s252_s15 }
  0x18   : > { %p1472_p11 = pnand %p1072_p9, %p1693_p1  ;;  %p1175_p7 = scmp.lt.s32.totalorder %s1166_s19, %s1166_s19 }
  0x1a   : > { %p1157_p12 = pneg %p1472_p11  ;;  %p1176_p10 = por %p1175_p7, %p1174_p5 }
  0x1c   : > { %p1169_p0 = pnand %p1167_p13, %p1157_p12 }
  0x1e   : > { %p1170_p3 = pneg %p1169_p0 }
  0x20   : > { %p1177_p9 = pnand %p1176_p10, %p1170_p3 }
  0x22   : > { %1180 = shalt.err (!%p1177_p9)
}
  0x23   : > { %s1367_s20 = smov 256   ;;  %s1368_s21 = smov 16  }
  0x24   : > { %s1705_s1 = sld [smem:[#allocation18_spill]]  ;;  %s1192_s24 = scalar_lea.vmem %s268_s18, 1024 }
  0x25   : > { %p1193_p1 = scmp.ne.s32.totalorder %s268_s18, %s1192_s24  ;;  %p1200_p2 = scmp.lt.s32.totalorder %s268_s18, %s268_s18 }
  0x26   : > { %p1201_p6 = scmp.lt.s32.totalorder %s1192_s24, %s1192_s24 }
  0x27   : > { %p1195_p13 = pnand %p1193_p1, %p1157_p12 }
  0x28   : > { %p1202_p5 = por %p1201_p6, %p1200_p2 }
  0x29   : > { %p1196_p0 = pneg %p1195_p13 }
  0x2a   : > { %1075 = dma.hbm_to_vmem [thread:$0]  (!%p1472_p11), %s1705_s1, 2048, %s252_s15, [#allocation6], %s1367_s20, %s1367_s20, %s1368_s21  }
  0x2b   : > { %p1203_p10 = pnand %p1202_p5, %p1196_p0 }
  0x2d   : > { %1206 = shalt.err (!%p1203_p10)
}
  0x2e   : > { %s1694_s25 = smov 128   ;;  %s1695_s26 = smov 8  }
  0x2f   : > { %s1706_s3 = sld [smem:[#allocation19_spill]]  ;;  %s1371_s15 = smov [#allocation8]  }
  0x30   : > { %s283_s17 = sshll.u32 %s1371_s15, 4  ;;  %s1498_s19 = sadd.s32 1, %s1363_s30   ;;  %s284_s17 = int_to_ptr.vmem [resolvable:$true] %s283_s17 }
  0x31   : > { %s1218_s20 = scalar_lea.vmem %s284_s17, 2048  ;;  %p1226_p3 = scmp.lt.s32.totalorder %s284_s17, %s284_s17 }
  0x32   : > { %p1219_p1 = scmp.ne.s32.totalorder %s284_s17, %s1218_s20  ;;  %p1227_p7 = scmp.lt.s32.totalorder %s1218_s20, %s1218_s20 }
  0x34   : > { %p1221_p2 = pnand %p1219_p1, %p1157_p12  ;;  %p1228_p9 = por %p1227_p7, %p1226_p3 }
  0x35   : > { %1078 = dma.hbm_to_vmem [thread:$0]  (!%p1472_p11), %s1706_s3, 1024, %s268_s18, [#allocation6], %s1694_s25, %s1694_s25, %s1695_s26  }
  0x36   : > { %p1222_p6 = pneg %p1221_p2 }
  0x38   : > { %p1229_p13 = pnand %p1228_p9, %p1222_p6 }
  0x3a   : > { %1232 = shalt.err (!%p1229_p13)
}
  0x3b   : > { %1081 = dma.hbm_to_vmem [thread:$0]  (!%p1472_p11), %s1689_s5, 2048, %s284_s17, [#allocation9], %s1694_s25, %s1694_s25, %s1695_s26  }
  0x3c   : > { %s34_s22 = ssub.s32 %s1363_s30, %s1498_s19  ;;  %s37_s16 = sadd.s32 1, %s1359_s29 }
  0x3d   : > { %p35_p12 = scmp.eq.s32.totalorder %s34_s22, 0  ;;  %p44_p0 = scmp.ne.s32.totalorder %s1359_s29, %s1355_s28 }
  0x3e   : > { %p45_p5 = scmp.eq.s32.totalorder %s1363_s30, 0  ;;  %p1096_p10 = scmp.lt.s32.totalorder %s1363_s30, 2 }
  0x3f   : > { %s1519_s23 = scalar_select %p35_p12, %s1359_s29, %s37_s16  }
  0x40   : > { %p46_p1 = por %p45_p5, %p44_p0  ;;  %p1707_p2 = scmp.eq.s32.totalorder %s1444_s9, 1 }
  0x41   : > { %s300_s10 = sand.u32 1, %s1359_s29   ;;  %s970_s14 = sshll.u32 %s1363_s30, 8 }
  0x42   : > { %p1523_p6 = por %p1707_p2, %p44_p0  ;;  %s947_s15 = sshll.u32 %s300_s10, 4 }
  0x43   : > { %s1532_s17 = scalar_lea.hbm %s1684_s0, %s970_s14  ;;  %s304_s21 = scalar_lea.vmem [#allocation2], %s947_s15 }
  0x44   : > { %s1708_s24 = scalar_select %p1523_p6, 1, 0 }
  0x45   : > { %s311_s22 = sshll.u32 %s304_s21, 4  ;;  %p1534_p11 = pnand %p1096_p10, %p46_p1  ;;  %s1538_s22 = int_to_ptr.vmem [resolvable:$true] %s311_s22 }
  0x46   : > { %s1540_s25 = scalar_lea.sflag [#allocation3], %s300_s10  ;;  %s1233_s26 = scalar_lea.hbm %s1532_s17, 256 }
  0x47   : > { %p1234_p3 = scmp.ne.s32.totalorder %s1532_s17, %s1233_s26  ;;  %p1235_p7 = pneg %p1534_p11 }
  0x48   : > { %s1238_s15 = scalar_lea.hbm %s1684_s0, 512  ;;  %p1239_p12 = scmp.lt.s32.totalorder %s1532_s17, %s1684_s0 }
  0x49   : > { %p1236_p9 = pnand %p1235_p7, %p1234_p3  ;;  %p1240_p0 = scmp.lt.s32.totalorder %s1238_s15, %s1233_s26 }
  0x4b   : > { %p1237_p13 = pneg %p1236_p9  ;;  %p1241_p5 = por %p1240_p0, %p1239_p12 }
  0x4d   : > { %p1242_p10 = pnand %p1241_p5, %p1237_p13 }
  0x4f   : > { %1245 = shalt.err (!%p1242_p10)
}
  0x50   : > { %s1246_s10 = scalar_lea.vmem %s1538_s22, 256  ;;  %s1372_s1 = smov [#allocation2]  }
  0x51   : > { %p1247_p1 = scmp.ne.s32.totalorder %s1538_s22, %s1246_s10  ;;  %s1251_s3 = sshll.u32 %s1372_s1, 4  ;;  %s1252_s3 = int_to_ptr.vmem [resolvable:$false] %s1251_s3 }
  0x52   : > { %s1253_s14 = scalar_lea.vmem %s1252_s3, 512  ;;  %p1254_p9 = scmp.lt.s32.totalorder %s1538_s22, %s1252_s3 }
  0x53   : > { %p1249_p2 = pnand %p1247_p1, %p1235_p7  ;;  %p1255_p6 = scmp.lt.s32.totalorder %s1253_s14, %s1246_s10 }
  0x55   : > { %p1250_p3 = pneg %p1249_p2  ;;  %p1256_p4 = por %p1255_p6, %p1254_p9 }
  0x57   : > { %p1257_p8 = pnand %p1256_p4, %p1250_p3 }
  0x59   : > { %1260 = shalt.err (!%p1257_p8)
}
  0x5a   : > { %s1710_s26 = smov 8   ;;  %s1711_s20 = smov 128  }
  0x5b   : > { %1085 = dma.hbm_to_vmem [thread:$0]  (!%p1534_p11), %s1532_s17, 256, %s1538_s22, %s1540_s25, %s1711_s20, %s1711_s20, %s1710_s26  }
  0x5c   : > { %p1712_p7 = scmp.ne.s32.totalorder %s1703_s13, 0 }
  0x5d   : > { %s1567_s1 = sand.u32 (!%p1712_p7), 1, %s1355_s28   ;;  %p1713_p4 = scmp.ne.s32.totalorder (!%p1712_p7), %s1701_s11, 0 }
  0x5e   : > { %323 = sbr.rel (%p1712_p7) target bundleno = 992 (0x3e0), region = 48  ;;  %s951_s3 = sshll.u32 (!%p1712_p7), %s1567_s1, 4 }
  0x5f   : > { %s326_s15 = scalar_lea.sflag (!%p1712_p7), [#allocation3], %s1567_s1  ;;  %s1573_s16 = scalar_lea.vmem (!%p1712_p7), [#allocation2], %s951_s3 }
  0x63   : > { %1330 = dma.done.wait (%p1713_p4), %s326_s15, 256  }
  0x64   : > { %1332 = vsyncadd (%p1713_p4), %s326_s15, 4294967040  ;;  %p1714_p8 = scmp.eq.s32.totalorder %s1444_s9, 0 }
  0x66   : > { %1334 = dma.done.wait (%p1714_p8), [#allocation6], 3072   ;;  %p1715_p6 = pmov %p1714_p8 }
  0x68   : > { %1336 = vsyncadd (%p1715_p6), [#allocation6], 4294964224  ;;  %p1716_p11 = pmov %p1715_p6 }
  0x69   : > { %p1717_p13 = pmov %p1715_p6 }
  0x6a   : > { %1338 = dma.done.wait (%p1716_p11), [#allocation9], 2048  }
  0x6b   : > { %1340 = vsyncadd (%p1717_p13), [#allocation9], 4294965248  ;;  %v1373_v0 = vmov 0.0   ;;  %v398_v1 = vld [vmem:[#allocation5 + $0x78] sm:$0xff]  ;;  %v397_v2 = vld [vmem:[#allocation5 + $0x70] sm:$0xff]  ;;  %vm411_vm0 = vcmask 523264   ;;  %v401_v39 = vlaneseq }
  0x6c   : > { %482 = vmatprep.mubr.f32.mxu1 %v1373_v0  ;;  %v396_v3 = vld [vmem:[#allocation5 + $0x68] sm:$0xff]  ;;  %434 = vmatprep.subr.mxu1 %v398_v1  ;;  %v395_v4 = vld [vmem:[#allocation5 + $0x60] sm:$0xff]  ;;  %v394_v5 = vld [vmem:[#allocation5 + $0x58] sm:$0xff]  ;;  %s1604_s21 = scalar_lea.vmem [#allocation11], %s951_s3  ;;  %vm745_vm1 = vcmask 1041409   ;;  %vm748_vm2 = vcmask 1041408  }
  0x6d   : > { %435 = vmatpush1.msra.mxu1 %v397_v2  ;;  %v393_v6 = vld [vmem:[#allocation5 + $0x50] sm:$0xff]  ;;  %v392_v7 = vld [vmem:[#allocation5 + $0x48] sm:$0xff]  ;;  %v391_v8 = vld [vmem:[#allocation5 + $0x40] sm:$0xff]  ;;  %v402_v40 = vshrl.u32 %v401_v39, 7  ;;  %s807_s10 = sshll.u32 %s1604_s21, 4  ;;  %s971_s14 = sshll.u32 %s1444_s9, 8  ;;  %s1610_s10 = int_to_ptr.vmem [resolvable:$true] %s807_s10 }
  0x6e   : > { %436 = vmatprep.subr.mxu1 %v396_v3  ;;  %v390_v9 = vld [vmem:[#allocation5 + $0x38] sm:$0xff]  ;;  %v389_v10 = vld [vmem:[#allocation5 + $0x30] sm:$0xff]  ;;  %v388_v11 = vld [vmem:[#allocation5 + $0x28] sm:$0xff]  ;;  %s1616_s3 = scalar_lea.hbm %s1692_s8, %s971_s14  ;;  %s781_s15 = scalar_lea.sflag [#allocation12], %s1567_s1 }
  0x6f   : > { %437 = vmatpush1.msra.mxu1 %v395_v4  ;;  %v387_v12 = vld [vmem:[#allocation5 + $0x20] sm:$0xff]  ;;  %v386_v13 = vld [vmem:[#allocation5 + $0x18] sm:$0xff]  ;;  %v385_v14 = vld [vmem:[#allocation5 + $0x10] sm:$0xff]  ;;  %v407_v41 = vsub.s32 1, %v402_v40  ;;  %v403_v56 = vsub.s32 0, %v402_v40  ;;  %p1718_p0 = scmp.ne.s32.totalorder %s1708_s24, 0 }
  0x70   : > { %438 = vmatprep.subr.mxu1 %v394_v5  ;;  %v384_v15 = vld [vmem:[#allocation5 + $0x8] sm:$0xff]  ;;  %v383_v16 = vld [vmem:[#allocation5] sm:$0xff]  ;;  %v504_v18 = vld [vmem:[#allocation7 + $0x38] sm:$0xff]  ;;  %s1374_s11 = smov [#allocation11]  }
  0x71   : > { %439 = vmatpush1.msra.mxu1 %v393_v6  ;;  %v381_v17 = vld [vmem:[%s1573_s16] sm:$0xff]  ;;  %v382_v20 = vld [vmem:[%s1573_s16 + $0x8] sm:$0xff]  ;;  %s1261_s16 = scalar_lea.vmem %s1610_s10, 256  ;;  %s1265_s13 = sshll.u32 %s1374_s11, 4  ;;  %s1266_s13 = int_to_ptr.vmem [resolvable:$false] %s1265_s13 }
  0x72   : > { %440 = vmatprep.subr.mxu1 %v392_v7  ;;  %v503_v19 = vld [vmem:[#allocation7 + $0x30] sm:$0xff]  ;;  %v502_v21 = vld [vmem:[#allocation7 + $0x28] sm:$0xff]  ;;  %v501_v22 = vld [vmem:[#allocation7 + $0x20] sm:$0xff]  ;;  %p1262_p12 = scmp.ne.s32.totalorder %s1610_s10, %s1261_s16  ;;  %s1267_s25 = scalar_lea.vmem %s1266_s13, 512 }
  0x73   : > { %441 = vmatpush1.msra.mxu1 %v391_v8  ;;  %v500_v23 = vld [vmem:[#allocation7 + $0x18] sm:$0xff]  ;;  %v499_v24 = vld [vmem:[#allocation7 + $0x10] sm:$0xff]  ;;  %v498_v25 = vld [vmem:[#allocation7 + $0x8] sm:$0xff]  ;;  %p1268_p1 = scmp.lt.s32.totalorder %s1610_s10, %s1266_s13  ;;  %p1269_p2 = scmp.lt.s32.totalorder %s1267_s25, %s1261_s16 }
  0x74   : > { %442 = vmatprep.subr.mxu1 %v390_v9  ;;  %v497_v26 = vld [vmem:[#allocation7] sm:$0xff]  ;;  %v610_v27 = vld [vmem:[#allocation8 + $0x78] sm:$0xff]  ;;  %v609_v28 = vld [vmem:[#allocation8 + $0x70] sm:$0xff]  ;;  %p1263_p5 = pnand %p1262_p12, %p1718_p0 }
  0x75   : > { %443 = vmatpush1.msra.mxu1 %v389_v10  ;;  %1019 = vmatprep.subr.mxu0 %v610_v27  ;;  %v608_v29 = vld [vmem:[#allocation8 + $0x68] sm:$0xff]  ;;  %v607_v30 = vld [vmem:[#allocation8 + $0x60] sm:$0xff]  ;;  %v606_v31 = vld [vmem:[#allocation8 + $0x58] sm:$0xff]  ;;  %p1270_p3 = por %p1269_p2, %p1268_p1 }
  0x76   : > { %444 = vmatprep.subr.mxu1 %v388_v11  ;;  %1020 = vmatpush3.msra.mxu0 %v610_v27  ;;  %v605_v32 = vld [vmem:[#allocation8 + $0x50] sm:$0xff]  ;;  %v604_v33 = vld [vmem:[#allocation8 + $0x48] sm:$0xff]  ;;  %v603_v34 = vld [vmem:[#allocation8 + $0x40] sm:$0xff]  ;;  %p1264_p10 = pneg %p1263_p5 }
  0x77   : > { %445 = vmatpush1.msra.mxu1 %v387_v12  ;;  %1021 = vmatprep.subr.mxu0 %v609_v28  ;;  %v602_v35 = vld [vmem:[#allocation8 + $0x38] sm:$0xff]  ;;  %v601_v36 = vld [vmem:[#allocation8 + $0x30] sm:$0xff]  ;;  %v600_v37 = vld [vmem:[#allocation8 + $0x28] sm:$0xff] }
  0x78   : > { %446 = vmatprep.subr.mxu1 %v386_v13  ;;  %1022 = vmatpush3.msra.mxu0 %v609_v28  ;;  %v599_v38 = vld [vmem:[#allocation8 + $0x20] sm:$0xff]  ;;  %v598_v52 = vld [vmem:[#allocation8 + $0x18] sm:$0xff]  ;;  %v597_v53 = vld [vmem:[#allocation8 + $0x10] sm:$0xff]  ;;  %p1271_p9 = pnand %p1270_p3, %p1264_p10 }
  0x79   : > { %447 = vmatpush1.msra.mxu1 %v385_v14  ;;  %1023 = vmatprep.subr.mxu0 %v608_v29  ;;  %v399_v42 = vld [vmem:[%s1686_s2] sm:$0x3]  ;;  %v596_v54 = vld [vmem:[#allocation8 + $0x8] sm:$0xff] }
  0x7a   : > { %448 = vmatprep.subr.mxu1 %v384_v15  ;;  %1024 = vmatpush3.msra.mxu0 %v608_v29  ;;  %v408_v43 = vrot.slane %v399_v42, %v407_v41  ;;  %v595_v55 = vld [vmem:[#allocation8] sm:$0xff]  ;;  %v404_v57 = vrot.slane %v399_v42, %v403_v56 }
  0x7b   : > { %449 = vmatpush1.msra.mxu1 %v383_v16  ;;  %1025 = vmatprep.subr.mxu0 %v607_v30  ;;  %v959_v58 = vld [vmem:[%s1688_s4] ss:$0 sm:$0xff] }
  0x7c   : > { %957 = vmatmul.mubr.msk.f32.vlgmr.msra.gmra.mxu1 %vm411_vm0, %v381_v17  ;;  %1000 = vmatprep.subr.mxu1 %v504_v18  ;;  %v962_v3 = vld [vmem:[%s1690_s6] ss:$0 sm:$0xff] }
  0x7d   : > { %488 = vmatprep.mubr.f32.mxu1 %v1373_v0  ;;  %1001 = vmatpush3.msra.mxu1 %v504_v18 }
  0x7e   : > { %1002 = vmatprep.subr.mxu1 %v503_v19  ;;  %1026 = vmatpush3.msra.mxu0 %v607_v30 }
  0x7f   : > { %1003 = vmatpush3.msra.mxu1 %v503_v19  ;;  %1027 = vmatprep.subr.mxu0 %v606_v31 }
  0x80   : > { %958 = vmatmul.mubr.msk.f32.gmra.mxu1 %vm411_vm0, %v382_v20  ;;  %1004 = vmatprep.subr.mxu1 %v502_v21 }
  0x81   : > { %1005 = vmatpush3.msra.mxu1 %v502_v21  ;;  %1028 = vmatpush3.msra.mxu0 %v606_v31 }
  0x82   : > { %1006 = vmatprep.subr.mxu1 %v501_v22  ;;  %1029 = vmatprep.subr.mxu0 %v605_v32 }
  0x83   : > { %1007 = vmatpush3.msra.mxu1 %v501_v22  ;;  %1030 = vmatpush3.msra.mxu0 %v605_v32 }
  0x84   : > { %1008 = vmatprep.subr.mxu1 %v500_v23  ;;  %1031 = vmatprep.subr.mxu0 %v604_v33 }
  0x85   : > { %1009 = vmatpush3.msra.mxu1 %v500_v23  ;;  %1032 = vmatpush3.msra.mxu0 %v604_v33 }
  0x86   : > { %1010 = vmatprep.subr.mxu1 %v499_v24  ;;  %1033 = vmatprep.subr.mxu0 %v603_v34 }
  0x87   : > { %1011 = vmatpush3.msra.mxu1 %v499_v24  ;;  %1034 = vmatpush3.msra.mxu0 %v603_v34 }
  0x88   : > { %1012 = vmatprep.subr.mxu1 %v498_v25  ;;  %1035 = vmatprep.subr.mxu0 %v602_v35 }
  0x89   : > { %1013 = vmatpush3.msra.mxu1 %v498_v25  ;;  %1036 = vmatpush3.msra.mxu0 %v602_v35 }
  0x8a   : > { %1014 = vmatprep.subr.mxu1 %v497_v26  ;;  %1037 = vmatprep.subr.mxu0 %v601_v36 }
  0x8b   : > { %1015 = vmatpush3.msra.mxu1 %v497_v26  ;;  %1038 = vmatpush3.msra.mxu0 %v601_v36 }
  0x8c   : > { %1039 = vmatprep.subr.mxu0 %v600_v37 }
  0x8d   : > { %1040 = vmatpush3.msra.mxu0 %v600_v37 }
  0x8e   : > { %1041 = vmatprep.subr.mxu0 %v599_v38 }
  0x8f   : > { %1042 = vmatpush3.msra.mxu0 %v599_v38 }
  0x90   : > { %1043 = vmatprep.subr.mxu0 %v598_v52 }
  0x91   : > { %1044 = vmatpush3.msra.mxu0 %v598_v52 }
  0x92   : > { %1045 = vmatprep.subr.mxu0 %v597_v53 }
  0x93   : > { %1046 = vmatpush3.msra.mxu0 %v597_v53 }
  0x94   : > { %1047 = vmatprep.subr.mxu0 %v596_v54 }
  0x95   : > { %1048 = vmatpush3.msra.mxu0 %v596_v54 }
  0x96   : > { %1049 = vmatprep.subr.mxu0 %v595_v55 }
  0x97   : > { %1050 = vmatpush3.msra.mxu0 %v595_v55 }
 0x13c   : > { %v484_v44 = vpop.f32.mrf.mxu1 }
 0x13d   : > { %v485_v62 = vadd.f32 %v484_v44, %v404_v57 }
 0x13e   : > { %v486_v45 = vpop.f32.mrf.mxu1 }
 0x13f   : > { %v487_v46 = vadd.f32 %v486_v45, %v408_v43 }
 0x140   : > { %v490_v47 = vpop.f32.mrf.mxu1 }
 0x141   : > { %v495_v48 = vmax.f32 %v487_v46, 0.0  ;;  %v491_v0 = vadd.f32 %v490_v47, %v404_v57 }
 0x142   : > { %v492_v49 = vpop.f32.mrf.mxu1 }
 0x143   : > { %v493_v50 = vadd.f32 %v492_v49, %v408_v43  ;;  %1016 = vmatprep.mubr.msk.f32.mxu1 %vm411_vm0, %v495_v48 }
 0x145   : > { %v496_v51 = vmax.f32 %v493_v50, 0.0 }
 0x147   : > { %1017 = vmatmul.mubr.msk.f32.vlgmr.msra.gmra.mxu1 %vm411_vm0, %v496_v51 }
 0x207   : > { %v1018_v59 = vpop.f32.mrf.mxu1 }
 0x208   : > { %v590_v60 = vadd.f32 %v1018_v59, %v959_v58 }
 0x209   : > { %v584_v61 = vpop.f32.mrf.mxu1 }
 0x20a   : > { %v585_v63 = vadd.f32 %v959_v58, %v584_v61  ;;  %v594_v2 = vadd.f32 %v590_v60, %v491_v0 }
 0x20c   : > { %v593_v1 = vadd.f32 %v585_v63, %v485_v62 }
 0x20e   : > { %1051 = vmatprep.mubr.f32.mxu0 %v593_v1 }
 0x20f   : > { %1052 = vmatmul.mubr.f32.vlgmr.msra.gmra.mxu0 %v594_v2 }
 0x2cf   : > { %v1053_v4 = vpop.f32.mrf.mxu0 }
 0x2d0   : > { %v690_v5 = vadd.f32 %v1053_v4, %v962_v3 }
 0x2d1   : > { %v684_v6 = vpop.f32.mrf.mxu0 }
 0x2d2   : > { %v699_v7 = vrot.slane %v690_v5, 4  ;;  %774 = vst [vmem:[%s1604_s21 + $0x8] sm:$0xff] %v690_v5  ;;  %v685_v8 = vadd.f32 %v962_v3, %v684_v6 }
 0x2d4   : > { %v700_v9 = vmax.f32 %v690_v5, %v699_v7  ;;  %v693_v10 = vrot.slane %v685_v8, 4  ;;  %773 = vst [vmem:[%s1604_s21] sm:$0xff] %v685_v8 }
 0x2d6   : > { %v701_v11 = vrot.slane %v700_v9, 2  ;;  %v694_v12 = vmax.f32 %v685_v8, %v693_v10 }
 0x2d8   : > { %v702_v13 = vmax.f32 %v700_v9, %v701_v11  ;;  %v695_v14 = vrot.slane %v694_v12, 2 }
 0x2da   : > { %v703_v15 = vrot.slane %v702_v13, 1  ;;  %v696_v16 = vmax.f32 %v694_v12, %v695_v14 }
 0x2dc   : > { %v704_v17 = vmax.f32 %v702_v13, %v703_v15  ;;  %v697_v18 = vrot.slane %v696_v16, 1 }
 0x2de   : > { %v706_v19 = vsub.f32 %v690_v5, %v704_v17  ;;  %v698_v20 = vmax.f32 %v696_v16, %v697_v18 }
 0x2e0   : > { %v709_v21 = vmul.f32 1.442695, %v706_v19  ;;  %v705_v22 = vsub.f32 %v685_v8, %v698_v20 }
 0x2e2   : > { %1143 = vpow2.f32 %v709_v21  ;;  %v707_v23 = vmul.f32 1.442695, %v705_v22 }
 0x2e4   : > { %1145 = vpow2.f32 %v707_v23 }
 0x2ef   : > { %v1144_v24 = vpop.eup %1143 }
 0x2f0   : > { %v717_v25 = vrot.slane %v1144_v24, 4 }
 0x2f1   : > { %v1146_v26 = vpop.eup %1145 }
 0x2f2   : > { %v711_v27 = vrot.slane %v1146_v26, 4  ;;  %v718_v28 = vadd.f32 %v1144_v24, %v717_v25 }
 0x2f4   : > { %v712_v29 = vadd.f32 %v1146_v26, %v711_v27  ;;  %v719_v30 = vrot.slane %v718_v28, 2 }
 0x2f6   : > { %v713_v31 = vrot.slane %v712_v29, 2  ;;  %v720_v32 = vadd.f32 %v719_v30, %v718_v28 }
 0x2f8   : > { %v714_v33 = vadd.f32 %v713_v31, %v712_v29  ;;  %v721_v34 = vrot.slane %v720_v32, 1 }
 0x2fa   : > { %v715_v35 = vrot.slane %v714_v33, 1  ;;  %v722_v36 = vadd.f32 %v721_v34, %v720_v32 }
 0x2fc   : > { %v716_v37 = vadd.f32 %v715_v35, %v714_v33  ;;  %1147 = vrcp.f32 %v722_v36 }
 0x2fe   : > { %1149 = vrcp.f32 %v716_v37 }
 0x309   : > { %v1148_v38 = vpop.eup %1147 }
 0x30a   : > { %v726_v39 = vmul.f32 %v1148_v38, %v1144_v24 }
 0x30b   : > { %v1150_v40 = vpop.eup %1149 }
 0x30c   : > { %v725_v41 = vmul.f32 %v1150_v40, %v1146_v26  ;;  %v728_v42 = vmul.f32 %v726_v39, %v594_v2 }
 0x30e   : > { %v727_v43 = vmul.f32 %v725_v41, %v593_v1  ;;  %v735_v44 = vrot.slane %v728_v42, 4 }
 0x310   : > { %v729_v45 = vrot.slane %v727_v43, 4  ;;  %v736_v46 = vadd.f32 %v735_v44, %v728_v42 }
 0x312   : > { %v730_v47 = vadd.f32 %v729_v45, %v727_v43  ;;  %v737_v48 = vrot.slane %v736_v46, 2 }
 0x314   : > { %v731_v49 = vrot.slane %v730_v47, 2  ;;  %v738_v50 = vadd.f32 %v737_v48, %v736_v46 }
 0x316   : > { %v732_v51 = vadd.f32 %v731_v49, %v730_v47  ;;  %v739_v52 = vrot.slane %v738_v50, 1 }
 0x318   : > { %v733_v53 = vrot.slane %v732_v51, 1  ;;  %v740_v54 = vadd.f32 %v739_v52, %v738_v50 }
 0x31a   : > { %v734_v55 = vadd.f32 %v733_v53, %v732_v51  ;;  %v742_v57 = vmul.f32 %v740_v54, %v740_v54 }
 0x31c   : > { %v741_v56 = vmul.f32 %v734_v55, %v734_v55 }
 0x31e   : > { %v746_v58 = vsel %vm745_vm1, %v742_v57, %v741_v56 }
 0x31f   : > { %v749_v59 = vsel %vm748_vm2, %v746_v58, 0.0 }
 0x320   : > { %750 = vadd.xlane.f32.xlu0 %v749_v59 }
 0x321   : > { %1274 = shalt.err (!%p1271_p9)
}
 0x322   : > { %s1275_s17 = scalar_lea.hbm %s1616_s3, 256  ;;  %s1279_s21 = scalar_lea.hbm %s1692_s8, 512 }
 0x323   : > { %p1276_p7 = scmp.ne.s32.totalorder %s1616_s3, %s1275_s17  ;;  %p1280_p6 = scmp.lt.s32.totalorder %s1616_s3, %s1692_s8 }
 0x324   : > { %p1281_p11 = scmp.lt.s32.totalorder %s1279_s21, %s1275_s17 }
 0x325   : > { %p1277_p4 = pnand %p1276_p7, %p1718_p0 }
 0x326   : > { %p1282_p13 = por %p1281_p11, %p1280_p6 }
 0x327   : > { %p1278_p8 = pneg %p1277_p4 }
 0x329   : > { %p1283_p12 = pnand %p1282_p13, %p1278_p8 }
 0x32b   : > { %1286 = shalt.err (!%p1283_p12)
}
 0x32c   : > { %s1375_s20 = smov 128   ;;  %s1376_s16 = smov 8  }
 0x32d   : > { %1069 = dma.vmem_to_hbm [thread:$0]  (%p1718_p0), %s1610_s10, 256, %s1616_s3, %s781_s15, %s1375_s20, %s1375_s20, %s1376_s16  }
 0x32e   : > { %s955_s11 = sshll.u32 %s1567_s1, 1  ;;  %s965_s13 = sshll.u32 %s1444_s9, 5 }
 0x32f   : > { %s371_s10 = scalar_lea.vmem [#allocation10], %s955_s11  ;;  %s1646_s17 = scalar_lea.hbm %s1691_s7, %s965_s13 }
 0x330   : > { %s794_s3 = sshll.u32 %s371_s10, 4  ;;  %s776_s22 = scalar_lea.sflag [#allocation4], %s1567_s1  ;;  %s795_s3 = int_to_ptr.vmem [resolvable:$true] %s794_s3 }
 0x331   : > { %s1287_s18 = scalar_lea.vmem %s795_s3, 32  ;;  %s1377_s9 = smov [#allocation10]  }
 0x332   : > { %p1288_p5 = scmp.ne.s32.totalorder %s795_s3, %s1287_s18  ;;  %s1291_s21 = sshll.u32 %s1377_s9, 4  ;;  %s1292_s21 = int_to_ptr.vmem [resolvable:$false] %s1291_s21 }
 0x333   : > { %s1293_s14 = scalar_lea.vmem %s1292_s21, 64  ;;  %p1294_p2 = scmp.lt.s32.totalorder %s795_s3, %s1292_s21 }
 0x334   : > { %p1289_p10 = pnand %p1288_p5, %p1718_p0  ;;  %p1295_p3 = scmp.lt.s32.totalorder %s1293_s14, %s1287_s18 }
 0x336   : > { %p1290_p1 = pneg %p1289_p10  ;;  %p1296_p9 = por %p1295_p3, %p1294_p2 }
 0x338   : > { %p1297_p7 = pnand %p1296_p9, %p1290_p1 }
 0x3a9   : > { %v751_v60 = vpop.xlane.xlu0 %750 }
 0x3aa   : > { %1151 = vrsqrt.f32 %v751_v60  ;;  %vm754_vm3 = vcmp.eq.f32.partialorder %v751_v60, inf  ;;  %v757_v63 = vand.u32 2147483648, %v751_v60  ;;  %vm756_vm4 = vcmp.eq.f32.partialorder %v751_v60, 0.0 }
 0x3b7   : > { %v1152_v61 = vpop.eup %1151 }
 0x3b8   : > { %v753_v62 = vmul.f32 %v1152_v61, %v751_v60 }
 0x3ba   : > { %v755_v0 = vsel %vm754_vm3, %v751_v60, %v753_v62 }
 0x3bb   : > { %v758_v1 = vsel %vm756_vm4, %v757_v63, %v755_v0 }
 0x3bc   : > { %v759_v2 = vadd.f32 1e-08, %v758_v1 }
 0x3be   : > { %1153 = vrcp.f32 %v759_v2 }
 0x3cb   : > { %v1154_v3 = vpop.eup %1153 }
 0x3cc   : > { %v762_v4 = vrot.slane %v1154_v3, 1  ;;  %v765_v6 = vmul.f32 %v1154_v3, %v734_v55 }
 0x3ce   : > { %v766_v5 = vmul.f32 %v762_v4, %v740_v54 }
 0x3d0   : > { %v769_v7 = vrot.slane %v766_v5, 7 }
 0x3d2   : > { %v770_v8 = vsel %vm745_vm1, %v769_v7, %v765_v6 }
 0x3d3   : > { %772 = vst [vmem:[%s371_s10] sm:$0x3] %v770_v8 }
 0x3d4   : > { %1300 = shalt.err (!%p1297_p7)
}
 0x3d5   : > { %s1301_s26 = scalar_lea.hbm %s1646_s17, 32  ;;  %s1305_s16 = scalar_lea.hbm %s1691_s7, 64 }
 0x3d6   : > { %p1302_p4 = scmp.ne.s32.totalorder %s1646_s17, %s1301_s26  ;;  %p1306_p11 = scmp.lt.s32.totalorder %s1646_s17, %s1691_s7 }
 0x3d7   : > { %p1307_p13 = scmp.lt.s32.totalorder %s1305_s16, %s1301_s26 }
 0x3d8   : > { %p1303_p8 = pnand %p1302_p4, %p1718_p0 }
 0x3d9   : > { %p1308_p12 = por %p1307_p13, %p1306_p11 }
 0x3da   : > { %p1304_p6 = pneg %p1303_p8 }
 0x3dc   : > { %p1309_p5 = pnand %p1308_p12, %p1304_p6 }
 0x3de   : > { %1312 = shalt.err (!%p1309_p5)
}
 0x3df   : > { %1068 = dma.vmem_to_hbm [thread:$0]  (%p1718_p0), %s795_s3, 32, %s1646_s17, %s776_s22  }
 0x3e0 PF: > { %s822_s10 = sand.u32 1, %s1351_s27   ;;  %p1719_p10 = scmp.ne.s32.totalorder %s1702_s12, 0 }
 0x3e1   : > { %p1720_p1 = scmp.ge.s32.totalorder %s1363_s30, 2  ;;  %s823_s15 = scalar_lea.sflag [#allocation4], %s822_s10 }
 0x3e3   : > { %p1087_p2 = pnand %p1720_p1, %p1719_p10 }
 0x3e5   : > { %p1088_p3 = pneg %p1087_p2 }
 0x3e7   : > { %1342 = dma.done.wait (%p1088_p3), %s823_s15, 32  }
 0x3e8   : > { %1344 = vsyncadd (%p1088_p3), %s823_s15, 4294967264  ;;  %s832_s25 = scalar_lea.sflag [#allocation12], %s822_s10 }
 0x3e9   : > { %1346 = dma.done.wait (%p1088_p3), %s832_s25, 256  }
 0x3ea   : > { %1348 = vsyncadd (%p1088_p3), %s832_s25, 4294967040  ;;  %p27_p0 = scmp.ge.s32.totalorder %s1498_s19, 4   ;;  %s1721_s27 = smov %s1355_s28 }
 0x3eb   : > { %s1722_s28 = smov %s1359_s29  ;;  %s1723_s29 = smov %s1519_s23 }
 0x3ec   : > { %s1724_s30 = smov %s1498_s19  ;;  %29 = sbr.rel (!%p27_p0) target bundleno = 12 (0xc), region = 122 }
 0x3f1   :  { %837 = vsyncpa [#allocation3], 1 }
 0x3f2   :  { %839 = vsyncpa [#allocation3 + $0x1], 1 }
 0x3f3   :  { %840 = vsyncpa [#allocation6], 1 }
 0x3f4   :  { %841 = vsyncpa [#allocation9], 1 }
 0x3f5   :  { %842 = vsyncpa [#allocation4], 1 }
 0x3f6   :  { %844 = vsyncpa [#allocation4 + $0x1], 1 }
 0x3f7   :  { %845 = vsyncpa [#allocation12], 1 }
 0x3f8   :  { %847 = vsyncpa [#allocation12 + $0x1], 1 }

</bundles_post_ra>
